<compile_context>
chip_gen: v7x
topology: tpu7x:2x2x1
jax: 0.10.0
libtpu: 0.0.40
codegen_flags: <defaults>
</compile_context>

<pallas_src>
import jax
import jax.numpy as jnp
import numpy as np
from jax.experimental import pallas as pl
from jax.experimental.pallas import tpu as pltpu

_NEG_BIG = -1e30  # bias for padded output columns -> exp() underflows to 0


def mlp_kernel(x_ref, w1_ref, b1_ref, w2_ref, b2_ref, o_ref, acc_ref):
    """One (batch-tile i, hidden-chunk k) grid step.

    fc1 for a hidden chunk is exact (full D_in resident), so ReLU of the chunk
    is exact; fc2 contributions of the chunk are accumulated in f32 scratch.
    """
    k = pl.program_id(1)

    @pl.when(k == 0)
    def _():
        acc_ref[...] = jnp.zeros_like(acc_ref)

    x = x_ref[...]
    # fc1 chunk on the MXU (f32 accumulation).  Cast the LHS to the weight
    # dtype so bf16 weights hit the bf16 MXU fast path on v6e/v7x.
    h = jnp.dot(x.astype(w1_ref.dtype), w1_ref[...],
                preferred_element_type=jnp.float32)
    h = jnp.maximum(h + b1_ref[...], 0.0)          # bias + ReLU in f32 (VPU)
    # fc2 partial for this hidden chunk, accumulated in f32.
    acc_ref[...] += jnp.dot(h.astype(w2_ref.dtype), w2_ref[...],
                            preferred_element_type=jnp.float32)

    @pl.when(k == pl.num_programs(1) - 1)
    def _():
        logits = acc_ref[...] + b2_ref[...]
        # softmax over the feature axis (PyTorch Softmax(dim=1) on 2-D input).
        m = jnp.max(logits, axis=-1, keepdims=True)
        e = jnp.exp(logits - m)
        denom = jnp.sum(e, axis=-1, keepdims=True)
        # Exact normalization (no approx vrcp): rows sum to 1 exactly enough
        # for downstream MoE-gate consumers and the rtol=1e-3 reference check.
        o_ref[...] = (e / denom).astype(o_ref.dtype)


def _round_up(v, m):
    return (v + m - 1) // m * m


def _tpu_defaults():
    """(num_tensorcores, vmem_capacity_bytes, default_batch_tile).

    Conservative fallbacks (single TC, 64 MiB, bt=256) if the query fails
    (e.g. interpret mode on CPU) so nothing here can break compilation.
    """
    n_tc, vmem_cap, bt = 1, 64 << 20, 256
    try:
        info = pltpu.get_tpu_info()
        vmem_cap = int(getattr(info, "vmem_capacity_bytes", vmem_cap))
    except Exception:
        pass
    try:
        kind = jax.devices()[0].device_kind.lower()
        if "v7" in kind:
            n_tc = 2            # 2 TensorCores/chip: keep the parallel axis even
        if ("v5e" in kind) or ("v5 lite" in kind) or ("v5lite" in kind):
            bt = 128            # v5e: 1 vst slot; softmax temps spill at bt=256
    except Exception:
        pass
    return n_tc, vmem_cap, bt


def prepare_mlp_params(w1, b1, w2, b2):
    """One-time parameter preparation (do NOT call per forward step).

    Pads D_hid and D_out up to multiples of 128 so the fc1 output / fc2
    operands and the output store are lane-dense:
      * W1 extra columns and b1 extra entries are 0 -> ReLU(0) = 0 hidden,
      * W2 extra rows are 0 -> padded hidden contributes nothing,
      * b2 extra entries are -1e30 -> padded logits exp() to 0 in the softmax.
    Biases are kept in f32; weights keep their dtype (f32 or bf16).
    """
    D_in, D_hid = w1.shape
    D_hid2, D_out = w2.shape
    assert D_hid2 == D_hid
    D_hid_p = _round_up(D_hid, 128)
    D_out_p = _round_up(D_out, 128)

    w1_p = jnp.pad(w1, ((0, 0), (0, D_hid_p - D_hid)))
    b1_p = jnp.pad(jnp.asarray(b1, jnp.float32).reshape(1, -1),
                   ((0, 0), (0, D_hid_p - D_hid)))
    w2_p = jnp.pad(w2, ((0, D_hid_p - D_hid), (0, D_out_p - D_out)))
    b2_p = jnp.pad(jnp.asarray(b2, jnp.float32).reshape(1, -1),
                   ((0, 0), (0, D_out_p - D_out)),
                   constant_values=_NEG_BIG)
    return w1_p, b1_p, w2_p, b2_p, D_out


def mlp_forward(x, params, *, batch_tile=None, hidden_tile=None):
    """Fused fc1 -> ReLU -> fc2 -> softmax.  `params` from prepare_mlp_params."""
    w1, b1, w2, b2, d_out = params
    N, D_in = x.shape
    D_in_w, D_hid = w1.shape
    D_hid_w, D_out_p = w2.shape
    assert D_in_w == D_in and D_hid_w == D_hid
    assert D_hid % 128 == 0 and D_out_p % 128 == 0

    n_tc, vmem_cap, bt_default = _tpu_defaults()
    # ~75% of physical VMEM, never within 8 MiB of the cap, never below 32 MiB.
    vmem_limit = max(32 << 20, min(int(0.75 * vmem_cap), vmem_cap - (8 << 20)))

    # ---- batch tiling: big tiles amortize the ~0.35us/step overhead and fill
    # the MXU M dimension.  No x padding: a ragged final block is handled by
    # Pallas masking (rows are independent under the per-row softmax).
    bt = min(bt_default if batch_tile is None else batch_tile, _round_up(N, 8))
    if bt >= N:
        bt = N                               # single block == full dim (always legal)
    n_tiles = pl.cdiv(N, bt)
    if n_tc >= 2:                            # v7x only: keep the parallel axis even
        if n_tiles == 1 and N >= 256:
            cand_bt = _round_up(pl.cdiv(N, 2), 8)
            if cand_bt < N:
                n_tiles, bt = 2, cand_bt
        elif n_tiles > 1 and n_tiles % 2 == 1:
            cand = n_tiles + 1
            cand_bt = _round_up(pl.cdiv(N, cand), 8)
            if (cand - 1) * cand_bt < N:     # keep every block at least partly valid
                n_tiles, bt = cand, cand_bt

    # ---- hidden (fc2-K) tiling: keep weights fully resident when they fit,
    # otherwise stream 128/256/512-wide hidden chunks with an f32 accumulator.
    w1_is = w1.dtype.itemsize
    w2_is = w2.dtype.itemsize
    w_bytes = D_in * D_hid * w1_is + D_hid * D_out_p * w2_is
    budget = vmem_limit // 2                 # leave room for x / out / acc blocks
    if hidden_tile is not None:
        tk = int(hidden_tile)
        assert tk % 128 == 0 and D_hid % tk == 0
    elif 2 * w_bytes <= budget:              # 2x: constant blocks are double-buffered
        tk = D_hid
    else:
        tk = 128
        for cand in (512, 384, 256, 128):
            if D_hid % cand == 0:
                tk = cand
                if 2 * (D_in * cand * w1_is + cand * D_out_p * w2_is) <= budget:
                    break
    n_k = D_hid // tk

    out = pl.pallas_call(
        mlp_kernel,
        out_shape=jax.ShapeDtypeStruct((N, D_out_p), x.dtype),
        grid_spec=pltpu.PrefetchScalarGridSpec(
            num_scalar_prefetch=0,
            grid=(n_tiles, n_k),             # reduction axis (k) innermost
            in_specs=[
                pl.BlockSpec((bt, D_in), lambda i, k: (i, 0)),      # x tile
                pl.BlockSpec((D_in, tk), lambda i, k: (0, k)),      # W1 col-chunk
                pl.BlockSpec((1, tk), lambda i, k: (0, k)),         # b1 chunk
                pl.BlockSpec((tk, D_out_p), lambda i, k: (k, 0)),   # W2 row-chunk
                pl.BlockSpec((1, D_out_p), lambda i, k: (0, 0)),    # b2
            ],
            out_specs=pl.BlockSpec((bt, D_out_p), lambda i, k: (i, 0)),
            scratch_shapes=[pltpu.VMEM((bt, D_out_p), jnp.float32)],  # fc2 acc
        ),
        compiler_params=pltpu.CompilerParams(
            dimension_semantics=("parallel", "arbitrary"),
            vmem_limit_bytes=vmem_limit,
        ),
    )(x, w1, b1, w2, b2)
    return out[:, :d_out]


def init_linear_params(key, fan_in, fan_out, dtype=jnp.float32):
    # Deterministic init mimicking nn.Linear's U(-1/sqrt(fan_in), 1/sqrt(fan_in)).
    kw, kb = jax.random.split(key)
    bound = 1.0 / np.sqrt(fan_in)
    # stored as (in, out) = PyTorch weight.T
    w = jax.random.uniform(kw, (fan_in, fan_out), dtype, minval=-bound, maxval=bound)
    b = jax.random.uniform(kb, (1, fan_out), jnp.float32, minval=-bound, maxval=bound)
    return w, b


def _reference(x, w1, b1, w2, b2):
    h = jnp.maximum(jnp.dot(x, w1, precision=jax.lax.Precision.HIGHEST) + b1, 0.0)
    logits = jnp.dot(h, w2, precision=jax.lax.Precision.HIGHEST) + b2
    return jax.nn.softmax(logits, axis=1)


if __name__ == "__main__":
    key = jax.random.PRNGKey(0)
    k_x, k_fc1, k_fc2, k_x2, k_g1, k_g2 = jax.random.split(key, 6)

    # ---- small config matching the MoE gate MLP (ragged batch on purpose) ----
    batch, input_size, hidden_size, output_size = 20, 32, 64, 16
    x = jax.random.normal(k_x, (batch, input_size), jnp.float32)
    w1, b1 = init_linear_params(k_fc1, input_size, hidden_size)
    w2, b2 = init_linear_params(k_fc2, hidden_size, output_size)
    ref = _reference(x, w1, b1, w2, b2)

    # f32 weights: tight check (exact softmax normalization in kernel).
    params = prepare_mlp_params(w1, b1, w2, b2)
    out = jax.block_until_ready(mlp_forward(x, params))
    np.testing.assert_allclose(np.asarray(out), np.asarray(ref),
                               rtol=2e-3, atol=1e-5)

    # bf16 weights (v6e/v7x MXU fast path): loose check vs. f32 reference.
    params_bf16 = prepare_mlp_params(w1.astype(jnp.bfloat16), b1,
                                     w2.astype(jnp.bfloat16), b2)
    out_bf16 = jax.block_until_ready(mlp_forward(x, params_bf16))
    np.testing.assert_allclose(np.asarray(out_bf16), np.asarray(ref),
                               rtol=5e-2, atol=2e-2)

    # ---- exercise the hidden-dim-tiled accumulator path explicitly ----
    b2n, d2_in, d2_hid, d2_out = 64, 128, 512, 24
    x2 = jax.random.normal(k_x2, (b2n, d2_in), jnp.float32)
    g1w, g1b = init_linear_params(k_g1, d2_in, d2_hid)
    g2w, g2b = init_linear_params(k_g2, d2_hid, d2_out)
    ref2 = _reference(x2, g1w, g1b, g2w, g2b)
    params2 = prepare_mlp_params(g1w, g1b, g2w, g2b)
    out2 = jax.block_until_ready(mlp_forward(x2, params2, hidden_tile=128))
    np.testing.assert_allclose(np.asarray(out2), np.asarray(ref2),
                               rtol=2e-3, atol=1e-5)

    print("KERNEL_OK")
</pallas_src>

<mosaic_0001>
module attributes {stable_mosaic.version = 11 : i64} {
  func.func @mlp_kernel(%arg0: i32, %arg1: i32, %arg2: memref<20x32xf32, #tpu.memory_space<vmem>>, %arg3: memref<32x128xf32, #tpu.memory_space<vmem>>, %arg4: memref<1x128xf32, #tpu.memory_space<vmem>>, %arg5: memref<128x128xf32, #tpu.memory_space<vmem>>, %arg6: memref<1x128xf32, #tpu.memory_space<vmem>>, %arg7: memref<20x128xf32, #tpu.memory_space<vmem>>, %arg8: memref<20x128xf32, #tpu.memory_space<vmem>>) attributes {dimension_semantics = [#tpu.dimension_semantics<parallel>, #tpu.dimension_semantics<arbitrary>], iteration_bounds = array<i64: 1, 1>, scalar_prefetch = 0 : i64, scratch_operands = 1 : i64, tpu.core_type = #tpu.core_type<tc>, window_params = [{transform_indices = @transform_0, window_bounds = array<i64: 20, 32>}, {transform_indices = @transform_1, window_bounds = array<i64: 32, 128>}, {transform_indices = @transform_2, window_bounds = array<i64: 1, 128>}, {transform_indices = @transform_3, window_bounds = array<i64: 128, 128>}, {pipeline_mode = #tpu.pipeline_mode<synchronous>, transform_indices = @transform_4, window_bounds = array<i64: 1, 128>}, {transform_indices = @transform_5, window_bounds = array<i64: 20, 128>}]} {
    %c0_i32 = arith.constant 0 : i32
    %0 = arith.cmpi eq, %arg1, %c0_i32 : i32
    %1 = arith.extui %0 : i1 to i32
    %c0_i32_0 = arith.constant 0 : i32
    %2 = arith.cmpi ne, %1, %c0_i32_0 : i32
    scf.if %2 {
      %cst_16 = arith.constant 0.000000e+00 : f32
      %19 = vector.broadcast %cst_16 : f32 to vector<20x128xf32>
      %c0_17 = arith.constant 0 : index
      %c0_18 = arith.constant 0 : index
      %20 = vector.load %arg8[%c0_17, %c0_18] : memref<20x128xf32, #tpu.memory_space<vmem>>, vector<20x128xf32>
      tpu.vector_store %arg8[%c0_17, %c0_18], %19 {strides = array<i32>} : memref<20x128xf32, #tpu.memory_space<vmem>>, vector<20x128xf32>,
    } else {
    }
    %c0 = arith.constant 0 : index
    %c0_1 = arith.constant 0 : index
    %3 = vector.load %arg2[%c0, %c0_1] : memref<20x32xf32, #tpu.memory_space<vmem>>, vector<20x32xf32>
    %c0_2 = arith.constant 0 : index
    %c0_3 = arith.constant 0 : index
    %4 = vector.load %arg3[%c0_2, %c0_3] : memref<32x128xf32, #tpu.memory_space<vmem>>, vector<32x128xf32>
    %cst = arith.constant dense<0.000000e+00> : vector<20x128xf32>
    %5 = tpu.matmul %3, %4, %cst {dimension_numbers = #tpu.dot_dimension_numbers<[1], [0], [0], [1], [0, 0, 1, 1], [], []>} : vector<20x32xf32>, vector<32x128xf32>, vector<20x128xf32> -> vector<20x128xf32>
    %c0_4 = arith.constant 0 : index
    %c0_5 = arith.constant 0 : index
    %6 = vector.load %arg4[%c0_4, %c0_5] : memref<1x128xf32, #tpu.memory_space<vmem>>, vector<1x128xf32>
    %7 = vector.broadcast %6 : vector<1x128xf32> to vector<20x128xf32>
    %8 = arith.addf %5, %7 : vector<20x128xf32>
    %cst_6 = arith.constant 0.000000e+00 : f32
    %9 = vector.broadcast %cst_6 : f32 to vector<20x128xf32>
    %10 = arith.maximumf %8, %9 : vector<20x128xf32>
    %c0_7 = arith.constant 0 : index
    %c0_8 = arith.constant 0 : index
    %11 = vector.load %arg8[%c0_7, %c0_8] : memref<20x128xf32, #tpu.memory_space<vmem>>, vector<20x128xf32>
    %c0_9 = arith.constant 0 : index
    %c0_10 = arith.constant 0 : index
    %12 = vector.load %arg5[%c0_9, %c0_10] : memref<128x128xf32, #tpu.memory_space<vmem>>, vector<128x128xf32>
    %cst_11 = arith.constant dense<0.000000e+00> : vector<20x128xf32>
    %13 = tpu.matmul %10, %12, %cst_11 {dimension_numbers = #tpu.dot_dimension_numbers<[1], [0], [0], [1], [0, 0, 1, 1], [], []>} : vector<20x128xf32>, vector<128x128xf32>, vector<20x128xf32> -> vector<20x128xf32>
    %14 = arith.addf %11, %13 : vector<20x128xf32>
    %c0_12 = arith.constant 0 : index
    %c0_13 = arith.constant 0 : index
    %15 = vector.load %arg8[%c0_12, %c0_13] : memref<20x128xf32, #tpu.memory_space<vmem>>, vector<20x128xf32>
    tpu.vector_store %arg8[%c0_12, %c0_13], %14 {strides = array<i32>} : memref<20x128xf32, #tpu.memory_space<vmem>>, vector<20x128xf32>,
    %c0_i32_14 = arith.constant 0 : i32
    %16 = arith.cmpi eq, %arg1, %c0_i32_14 : i32
    %17 = arith.extui %16 : i1 to i32
    %c0_i32_15 = arith.constant 0 : i32
    %18 = arith.cmpi ne, %17, %c0_i32_15 : i32
    scf.if %18 {
      %c0_16 = arith.constant 0 : index
      %c0_17 = arith.constant 0 : index
      %19 = vector.load %arg8[%c0_16, %c0_17] : memref<20x128xf32, #tpu.memory_space<vmem>>, vector<20x128xf32>
      %c0_18 = arith.constant 0 : index
      %c0_19 = arith.constant 0 : index
      %20 = vector.load %arg6[%c0_18, %c0_19] : memref<1x128xf32, #tpu.memory_space<vmem>>, vector<1x128xf32>
      %21 = vector.broadcast %20 : vector<1x128xf32> to vector<20x128xf32>
      %22 = arith.addf %19, %21 : vector<20x128xf32>
      %cst_20 = arith.constant dense<0xFF800000> : vector<20xf32>
      %23 = vector.multi_reduction <maximumf>, %22, %cst_20 [1] : vector<20x128xf32> to vector<20xf32>
      %24 = vector.shape_cast %23 : vector<20xf32> to vector<20x1xf32>
      %25 = vector.broadcast %24 : vector<20x1xf32> to vector<20x128xf32>
      %26 = arith.subf %22, %25 : vector<20x128xf32>
      %27 = math.exp %26 : vector<20x128xf32>
      %cst_21 = arith.constant dense<0.000000e+00> : vector<20xf32>
      %28 = vector.multi_reduction <add>, %27, %cst_21 [1] : vector<20x128xf32> to vector<20xf32>
      %29 = vector.shape_cast %28 : vector<20xf32> to vector<20x1xf32>
      %30 = vector.broadcast %29 : vector<20x1xf32> to vector<20x128xf32>
      %31 = arith.divf %27, %30 : vector<20x128xf32>
      %c0_22 = arith.constant 0 : index
      %c0_23 = arith.constant 0 : index
      %32 = vector.load %arg7[%c0_22, %c0_23] : memref<20x128xf32, #tpu.memory_space<vmem>>, vector<20x128xf32>
      tpu.vector_store %arg7[%c0_22, %c0_23], %31 {strides = array<i32>} : memref<20x128xf32, #tpu.memory_space<vmem>>, vector<20x128xf32>,
    } else {
    }
    return
  }
  func.func @transform_0(%arg0: i32, %arg1: i32) -> (i32, i32) {
    %c0_i32 = arith.constant 0 : i32
    %c0_i32_0 = arith.constant 0 : i32
    return %arg0, %c0_i32 : i32, i32
  }
  func.func @transform_1(%arg0: i32, %arg1: i32) -> (i32, i32) {
    %c0_i32 = arith.constant 0 : i32
    %c0_i32_0 = arith.constant 0 : i32
    return %c0_i32, %arg1 : i32, i32
  }
  func.func @transform_2(%arg0: i32, %arg1: i32) -> (i32, i32) {
    %c0_i32 = arith.constant 0 : i32
    %c0_i32_0 = arith.constant 0 : i32
    return %c0_i32, %arg1 : i32, i32
  }
  func.func @transform_3(%arg0: i32, %arg1: i32) -> (i32, i32) {
    %c0_i32 = arith.constant 0 : i32
    %c0_i32_0 = arith.constant 0 : i32
    return %arg1, %c0_i32 : i32, i32
  }
  func.func @transform_4(%arg0: i32, %arg1: i32) -> (i32, i32) {
    %c0_i32 = arith.constant 0 : i32
    %c0_i32_0 = arith.constant 0 : i32
    %c0_i32_1 = arith.constant 0 : i32
    return %c0_i32, %c0_i32_0 : i32, i32
  }
  func.func @transform_5(%arg0: i32, %arg1: i32) -> (i32, i32) {
    %c0_i32 = arith.constant 0 : i32
    %c0_i32_0 = arith.constant 0 : i32
    return %arg0, %c0_i32 : i32, i32
  }
}

</mosaic_0001>

<bundles_post_ra>
// kernel: tpu_custom_call.1
= control target key start
LH: loop header
LB: loop body
LE: loop exit
PB: predicated region body
PF: predicated region fallthrough
CT: control target
= control target key end

     0   :  { %10 = vsyncpa [#allocation4], 0  ;;  %s712_s0 = inlined_call_operand.hbm [shape: f32[20,32], index: 0, kind: input, shape index: {}]   ;;  %s713_s1 = inlined_call_operand.hbm [shape: f32[32,128], index: 1, kind: input, shape index: {}]   ;;  %s714_s2 = inlined_call_operand.vmem [shape: f32[1,128], index: 2, kind: input, shape index: {}]   ;;  %s715_s3 = inlined_call_operand.hbm [shape: f32[128,128], index: 3, kind: input, shape index: {}]   ;;  %s716_s4 = inlined_call_operand.vmem [shape: f32[1,128], index: 4, kind: input, shape index: {}]   ;;  %s717_s5 = inlined_call_operand.hbm [shape: f32[20,128], index: 5, kind: output, shape index: {}]  }
   0x1   :  { %11 = vsyncpa [#allocation7], 0 }
   0x2   :  { %12 = vsyncpa [#allocation5], 0  ;;  %s582_s18 = smov [#allocation6]   ;;  %s583_s20 = smov [#allocation3]  }
   0x3   :  { %s30_s19 = sshll.u32 %s582_s18, 4  ;;  %s18_s21 = sshll.u32 %s583_s20, 4  ;;  %s31_s19 = int_to_ptr.vmem [resolvable:$true] %s30_s19  ;;  %s621_s21 = int_to_ptr.vmem [resolvable:$true] %s18_s21 }
   0x4   :  { %s488_s24 = scalar_lea.hbm %s713_s1, 512 }
   0x5   :  { %p489_p0 = scmp.ne.s32.totalorder %s713_s1, %s488_s24  ;;  %p492_p1 = scmp.lt.u32.totalorder %s488_s24, %s713_s1 }
   0x7   :  { %p494_p2 = pnand %p492_p1, %p489_p0 }
   0x9   :  { %497 = shalt.err (!%p494_p2)
}
   0xa   :  { %s498_s29 = scalar_lea.vmem %s31_s19, 512  ;;  %p503_p4 = scmp.lt.s32.totalorder %s31_s19, %s31_s19 }
   0xb   :  { %p499_p3 = scmp.ne.s32.totalorder %s31_s19, %s498_s29  ;;  %p504_p5 = scmp.lt.s32.totalorder %s498_s29, %s498_s29 }
   0xd   :  { %p505_p6 = por %p504_p5, %p503_p4 }
   0xf   :  { %p506_p7 = pnand %p505_p6, %p499_p3 }
  0x11   :  { %509 = shalt.err (!%p506_p7)
}
  0x12   :  { %s584_s30 = smov 128   ;;  %s585_s6 = smov 8  }
  0x13   :  { %36 = dma.hbm_to_vmem [thread:$0]  %s713_s1, 512, %s31_s19, [#allocation7], %s584_s30, %s584_s30, %s585_s6  }
  0x14   :  { %s510_s11 = scalar_lea.hbm %s712_s0, 384 }
  0x15   :  { %p511_p8 = scmp.ne.s32.totalorder %s712_s0, %s510_s11  ;;  %p514_p9 = scmp.lt.u32.totalorder %s510_s11, %s712_s0 }
  0x17   :  { %p516_p10 = pnand %p514_p9, %p511_p8 }
  0x19   :  { %519 = shalt.err (!%p516_p10)
}
  0x1a   :  { %s520_s16 = scalar_lea.vmem %s621_s21, 384  ;;  %p525_p12 = scmp.lt.s32.totalorder %s621_s21, %s621_s21 }
  0x1b   :  { %p521_p11 = scmp.ne.s32.totalorder %s621_s21, %s520_s16  ;;  %p526_p13 = scmp.lt.s32.totalorder %s520_s16, %s520_s16 }
  0x1d   :  { %p527_p0 = por %p526_p13, %p525_p12 }
  0x1f   :  { %p528_p1 = pnand %p527_p0, %p521_p11 }
  0x21   :  { %531 = shalt.err (!%p528_p1)
}
  0x22   :  { %24 = dma.hbm_to_vmem [thread:$0]  %s712_s0, 384, %s621_s21, [#allocation4], %s584_s30, %s584_s30, %s585_s6  }
  0x23   :  { %s586_s18 = smov [#allocation8]   ;;  %s532_s23 = scalar_lea.hbm %s715_s3, 2048 }
  0x24   :  { %s44_s19 = sshll.u32 %s586_s18, 4  ;;  %p533_p2 = scmp.ne.s32.totalorder %s715_s3, %s532_s23  ;;  %s45_s19 = int_to_ptr.vmem [resolvable:$true] %s44_s19 }
  0x25   :  { %p536_p3 = scmp.lt.u32.totalorder %s532_s23, %s715_s3 }
  0x27   :  { %p538_p4 = pnand %p536_p3, %p533_p2 }
  0x29   :  { %541 = shalt.err (!%p538_p4)
}
  0x2a   :  { %s542_s28 = scalar_lea.vmem %s45_s19, 2048  ;;  %p547_p6 = scmp.lt.s32.totalorder %s45_s19, %s45_s19 }
  0x2b   :  { %p543_p5 = scmp.ne.s32.totalorder %s45_s19, %s542_s28  ;;  %p548_p7 = scmp.lt.s32.totalorder %s542_s28, %s542_s28 }
  0x2d   :  { %p549_p8 = por %p548_p7, %p547_p6 }
  0x2f   :  { %p550_p9 = pnand %p549_p8, %p543_p5 }
  0x31   :  { %553 = shalt.err (!%p550_p9)
}
  0x32   :  { %50 = dma.hbm_to_vmem [thread:$0]  %s715_s3, 2048, %s45_s19, [#allocation7], %s584_s30, %s584_s30, %s585_s6  }
  0x33   :  { %576 = dma.done.wait [#allocation4], 384  }
  0x34   :  { %577 = vsyncadd [#allocation4], 4294966912 }
  0x35   :  { %578 = dma.done.wait [#allocation7], 2560  }
  0x36   :  { %579 = vsyncadd [#allocation7], 4294964736  ;;  %v587_v0 = vmov 0.0|0.0   ;;  %vm588_vm0 = vmmov 0   ;;  %v589_v1 = vmov 0.0   ;;  %v72_v2 = vld [vmem:[#allocation6] sm:$0xff] }
  0x37   :  { %437 = vmatprep.subr.bf16.mxu0 %v587_v0  ;;  %387 = vmatprep.mubr.msk.f32.mxu0 %vm588_vm0, %v589_v1  ;;  %68 = vst [vmem:[#allocation2 + $0x10] sm:$0xf] %v589_v1  ;;  %v73_v3 = vld [vmem:[#allocation6 + $0x8] sm:$0xff]  ;;  %v74_v4 = vld [vmem:[#allocation6 + $0x10] sm:$0xff]  ;;  %v75_v6 = vld [vmem:[#allocation6 + $0x18] sm:$0xff]  ;;  %vm83_vm1 = vcmask 261120  }
  0x38   :  { %443 = vmatprep.subr.bf16.mxu1 %v587_v0  ;;  %428 = vmatprep.mubr.msk.f32.mxu1 %vm588_vm0, %v589_v1  ;;  %v438_v5 = vpack.c.bf16 %v73_v3, %v72_v2  ;;  %v179_v7 = vld [vmem:[#allocation8] sm:$0xff]  ;;  %v180_v8 = vld [vmem:[#allocation8 + $0x8] sm:$0xff]  ;;  %v441_v9 = vpack.c.bf16 %v75_v6, %v74_v4  ;;  %v181_v11 = vld [vmem:[#allocation8 + $0x10] sm:$0xff]  ;;  %vm301_vm2 = vcmask 1043456  }
  0x39   :  { %v444_v10 = vpack.c.bf16 %v180_v8, %v179_v7  ;;  %v182_v12 = vld [vmem:[#allocation8 + $0x18] sm:$0xff]  ;;  %v183_v14 = vld [vmem:[#allocation8 + $0x20] sm:$0xff]  ;;  %v184_v15 = vld [vmem:[#allocation8 + $0x28] sm:$0xff] }
  0x3a   :  { %439 = vmatpush3.bf16.msra.mxu0 %v438_v5  ;;  %v447_v13 = vpack.c.bf16 %v182_v12, %v181_v11  ;;  %v69_v16 = vld [vmem:[#allocation3] sm:$0xff]  ;;  %v450_v17 = vpack.c.bf16 %v184_v15, %v183_v14  ;;  %v185_v18 = vld [vmem:[#allocation8 + $0x30] sm:$0xff]  ;;  %v186_v19 = vld [vmem:[#allocation8 + $0x38] sm:$0xff] }
  0x3b   :  { %440 = vmatprep.subr.bf16.mxu0 %v587_v0  ;;  %445 = vmatpush3.bf16.msra.mxu1 %v444_v10  ;;  %v70_v20 = vld [vmem:[#allocation3 + $0x8] sm:$0xff]  ;;  %v453_v21 = vpack.c.bf16 %v186_v19, %v185_v18  ;;  %v187_v22 = vld [vmem:[#allocation8 + $0x40] sm:$0xff]  ;;  %v188_v23 = vld [vmem:[#allocation8 + $0x48] sm:$0xff] }
  0x3c   :  { %446 = vmatprep.subr.bf16.mxu1 %v587_v0  ;;  %v71_v24 = vld [vmem:[#allocation3 + $0x10] sm:$0xf]  ;;  %v456_v25 = vpack.c.bf16 %v188_v23, %v187_v22  ;;  %v189_v26 = vld [vmem:[#allocation8 + $0x50] sm:$0xff]  ;;  %v191_v29 = vld [vmem:[#allocation8 + $0x60] sm:$0xff] }
  0x3d   :  { %v190_v27 = vld [vmem:[#allocation8 + $0x58] sm:$0xff]  ;;  %v192_v30 = vld [vmem:[#allocation8 + $0x68] sm:$0xff]  ;;  %v193_v32 = vld [vmem:[#allocation8 + $0x70] sm:$0xff] }
  0x3e   :  { %442 = vmatpush3.bf16.msra.mxu0 %v441_v9  ;;  %v459_v28 = vpack.c.bf16 %v190_v27, %v189_v26  ;;  %v462_v31 = vpack.c.bf16 %v192_v30, %v191_v29  ;;  %v194_v33 = vld [vmem:[#allocation8 + $0x78] sm:$0xff]  ;;  %v348_v35 = vld [vmem:[%s714_s2] ss:$0 sm:$0xff]  ;;  %v178_v52 = vld [vmem:[#allocation2 + $0x10] sm:$0xf] }
  0x3f   :  { %448 = vmatpush3.bf16.msra.mxu1 %v447_v13  ;;  %v465_v34 = vpack.c.bf16 %v194_v33, %v193_v32  ;;  %v352_v53 = vld [vmem:[%s716_s4] ss:$0 sm:$0xff]  ;;  %s590_s4 = smov [#allocation9]  }
  0x40   :  { %449 = vmatprep.subr.bf16.mxu1 %v587_v0  ;;  %s335_s8 = sshll.u32 %s590_s4, 4  ;;  %s336_s8 = int_to_ptr.vmem [resolvable:$true] %s335_s8 }
  0x41   :  { %388 = vmatmul.mubr.msk.f32.vlgmr.msra.gmra.mrb[0].mxu0 %vm83_vm1, %v69_v16  ;;  %s554_s9 = scalar_lea.vmem %s336_s8, 384  ;;  %p559_p11 = scmp.lt.s32.totalorder %s336_s8, %s336_s8 }
  0x42   :  { %390 = vmatprep.mubr.msk.f32.mxu0 %vm588_vm0, %v589_v1  ;;  %p555_p10 = scmp.ne.s32.totalorder %s336_s8, %s554_s9  ;;  %p560_p12 = scmp.lt.s32.totalorder %s554_s9, %s554_s9 }
  0x43   :  { %451 = vmatpush3.bf16.msra.mxu1 %v450_v17 }
  0x44   :  { %452 = vmatprep.subr.bf16.mxu1 %v587_v0  ;;  %p561_p13 = por %p560_p12, %p559_p11 }
  0x45   :  { %391 = vmatmul.mubr.msk.f32.gmra.mrb[2].mxu0 %vm83_vm1, %v70_v20 }
  0x46   :  { %393 = vmatprep.mubr.msk.f32.mxu0 %vm588_vm0, %v589_v1  ;;  %p562_p0 = pnand %p561_p13, %p555_p10 }
  0x47   :  { %454 = vmatpush3.bf16.msra.mxu1 %v453_v21 }
  0x48   :  { %455 = vmatprep.subr.bf16.mxu1 %v587_v0 }
  0x49   :  { %394 = vmatmul.mubr.msk.f32.gmra.mrb[4].mxu0 %vm83_vm1, %v71_v24 }
  0x4b   :  { %457 = vmatpush3.bf16.msra.mxu1 %v456_v25 }
  0x4c   :  { %458 = vmatprep.subr.bf16.mxu1 %v587_v0 }
  0x4f   :  { %460 = vmatpush3.bf16.msra.mxu1 %v459_v28 }
  0x50   :  { %461 = vmatprep.subr.bf16.mxu1 %v587_v0 }
  0x53   :  { %463 = vmatpush3.bf16.msra.mxu1 %v462_v31 }
  0x54   :  { %464 = vmatprep.subr.bf16.mxu1 %v587_v0 }
  0x57   :  { %466 = vmatpush3.bf16.msra.mxu1 %v465_v34 }
 0x114   :  { %v159_v36 = vpop.f32.mrb[0].mxu0 }
 0x115   :  { %v160_v37 = vadd.f32 %v348_v35, %v159_v36  ;;  %v389_v38 = vpop.f32.mrb[1].mxu0 }
 0x117   :  { %v173_v39 = vmax.f32 %v160_v37, 0.0 }
 0x118   :  { %v164_v40 = vpop.f32.mrb[2].mxu0 }
 0x119   :  { %v165_v41 = vadd.f32 %v348_v35, %v164_v40  ;;  %v392_v42 = vpop.f32.mrb[3].mxu0  ;;  %429 = vmatmul.mubr.f32.vlgmr.msra.gmra.mrb[0].mxu1 %v173_v39 }
 0x11a   :  { %431 = vmatprep.mubr.msk.f32.mxu1 %vm588_vm0, %v589_v1 }
 0x11b   :  { %v174_v43 = vmax.f32 %v165_v41, 0.0 }
 0x11c   :  { %v169_v44 = vpop.f32.mrb[4].mxu0 }
 0x11d   :  { %v170_v45 = vadd.f32 %v348_v35, %v169_v44  ;;  %v395_v46 = vpop.f32.mrb[5].mxu0  ;;  %432 = vmatmul.mubr.f32.gmra.mrb[2].mxu1 %v174_v43 }
 0x11e   :  { %434 = vmatprep.mubr.msk.f32.mxu1 %vm588_vm0, %v589_v1 }
 0x11f   :  { %v175_v47 = vmax.f32 %v170_v45, 0.0 }
 0x121   :  { %435 = vmatmul.mubr.f32.gmra.mrb[4].mxu1 %v175_v47 }
 0x1ec   :  { %v261_v48 = vpop.f32.mrb[0].mxu1 }
 0x1ed   :  { %v430_v49 = vpop.f32.mrb[1].mxu1  ;;  %v294_v61 = vadd.f32 %v352_v53, %v261_v48 }
 0x1f0   :  { %v266_v50 = vpop.f32.mrb[2].mxu1 }
 0x1f1   :  { %v433_v51 = vpop.f32.mrb[3].mxu1  ;;  %v295_v54 = vadd.f32 %v352_v53, %v266_v50 }
 0x1f3   :  { %299 = vmax.xlane.f32.xlu1 %v295_v54 }
 0x1f4   :  { %v271_v55 = vpop.f32.mrb[4].mxu1 }
 0x1f5   :  { %v277_v56 = vadd.f32 %v271_v55, %v178_v52  ;;  %v436_v57 = vpop.f32.mrb[5].mxu1 }
 0x1f7   :  { %280 = vst [vmem:[#allocation2 + $0x10] sm:$0xf] %v277_v56 }
 0x1fe   :  { %v286_v58 = vld [vmem:[#allocation2 + $0x10] sm:$0xf] }
 0x1ff   :  { %v296_v59 = vadd.f32 %v352_v53, %v286_v58 }
 0x201   :  { %v302_v60 = vsel %vm301_vm2, %v296_v59, -inf }
 0x202   :  { %303 = vmax.xlane.f32.xlu0 %v302_v60 }
 0x206   :  { %297 = vmax.xlane.f32.xlu0 %v294_v61 }
 0x280   :  { %v300_v62 = vpop.xlane.xlu1 %299 }
 0x281   :  { %v306_v63 = vsub.f32 %v295_v54, %v300_v62 }
 0x283   :  { %v310_v0 = vmul.f32 1.442695, %v306_v63 }
 0x285   :  { %476 = vpow2.f32 %v310_v0 }
 0x28f   :  { %v304_v1 = vpop.xlane.xlu0 %303  ;;  %v477_v2 = vpop.eup %476 }
 0x290   :  { %v307_v3 = vsub.f32 %v296_v59, %v304_v1  ;;  %316 = vadd.xlane.f32.xlu0 %v477_v2 }
 0x292   :  { %v312_v6 = vmul.f32 1.442695, %v307_v3 }
 0x293   :  { %v298_v4 = vpop.xlane.xlu0 %297 }
 0x294   :  { %v305_v5 = vsub.f32 %v294_v61, %v298_v4 }
 0x296   :  { %v308_v7 = vmul.f32 1.442695, %v305_v5 }
 0x298   :  { %478 = vpow2.f32 %v308_v7 }
 0x299   :  { %480 = vpow2.f32 %v312_v6 }
 0x2a2   :  { %v479_v8 = vpop.eup %478 }
 0x2a3   :  { %v481_v9 = vpop.eup %480  ;;  %314 = vadd.xlane.f32.xlu1 %v479_v8 }
 0x2a4   :  { %v318_v10 = vsel %vm301_vm2, %v481_v9, 0.0 }
 0x2a7   :  { %319 = vadd.xlane.f32.xlu1 %v318_v10 }
 0x31d   :  { %v317_v11 = vpop.xlane.xlu0 %316 }
 0x31e   :  { %482 = vrcp.f32 %v317_v11 }
 0x328   :  { %v483_v12 = vpop.eup %482 }
 0x329   :  { %v324_v13 = vmul.f32 %v483_v12, %v477_v2 }
 0x32b   :  { %328 = vst [vmem:[#allocation9 + $0x8] sm:$0xff] %v324_v13 }
 0x330   :  { %v315_v14 = vpop.xlane.xlu1 %314 }
 0x331   :  { %484 = vrcp.f32 %v315_v14 }
 0x334   :  { %v320_v15 = vpop.xlane.xlu1 %319 }
 0x335   :  { %486 = vrcp.f32 %v320_v15 }
 0x33b   :  { %v485_v16 = vpop.eup %484 }
 0x33c   :  { %v322_v17 = vmul.f32 %v485_v16, %v479_v8 }
 0x33e   :  { %327 = vst [vmem:[#allocation9] sm:$0xff] %v322_v17 }
 0x33f   :  { %v487_v18 = vpop.eup %486 }
 0x340   :  { %v326_v19 = vmul.f32 %v487_v18, %v481_v9 }
 0x342   :  { %329 = vst [vmem:[#allocation9 + $0x10] sm:$0xf] %v326_v19 }
 0x343   :  { %565 = shalt.err (!%p562_p0)
}
 0x344   :  { %s566_s12 = scalar_lea.hbm %s717_s5, 384 }
 0x345   :  { %p567_p1 = scmp.ne.s32.totalorder %s717_s5, %s566_s12  ;;  %p570_p2 = scmp.lt.u32.totalorder %s566_s12, %s717_s5 }
 0x347   :  { %p572_p3 = pnand %p570_p2, %p567_p1 }
 0x349   :  { %575 = shalt.err (!%p572_p3)
}
 0x34a   :  { %341 = dma.vmem_to_hbm [thread:$0]  %s336_s8, 384, %s717_s5, [#allocation5], %s584_s30, %s584_s30, %s585_s6  }
 0x34b   :  { %580 = dma.done.wait [#allocation5], 384  }
 0x34c   :  { %581 = vsyncadd [#allocation5], 4294966912 }
 0x34d   :  { %345 = vsyncpa [#allocation4], 1 }
 0x34e   :  { %346 = vsyncpa [#allocation7], 1 }
 0x34f   :  { %347 = vsyncpa [#allocation5], 1 }

</bundles_post_ra>
